<compile_context>
chip_gen: v7x
topology: tpu7x:2x2x1
jax: 0.10.0
libtpu: 0.0.40
codegen_flags: <defaults>
</compile_context>

<pallas_src>
import functools
import math

import jax
import jax.numpy as jnp
from jax.experimental import pallas as pl
from jax.experimental.pallas import tpu as pltpu


def mha_kernel(x_ref, wq_ref, bq_ref, wk_ref, bk_ref, wv_ref, bv_ref,
               wo_ref, bo_ref, o_ref, acc_ref, *, scale, q_tile,
               single_q_tile, matmul_dtype, approx_recip):
    """One (batch, q-tile, head) grid step of multi-head self-attention."""
    h = pl.program_id(2)
    last_h = pl.num_programs(2) - 1

    @pl.when(h == 0)
    def _init():
        acc_ref[...] = jnp.zeros_like(acc_ref)

    mm = matmul_dtype
    xkv = x_ref[0].astype(mm)                                  # (T, D)
    if single_q_tile:
        xq = xkv                                               # (tq=T, D)
    else:
        start = pl.multiple_of(pl.program_id(1) * q_tile, q_tile)
        xq = x_ref[0, pl.ds(start, q_tile), :].astype(mm)      # (tq, D)

    # Per-head Q/K/V projections: 2-D MXU matmuls, fp32 accumulation + fp32 bias.
    q = jnp.dot(xq, wq_ref[0], preferred_element_type=jnp.float32) + bq_ref[0]   # (tq, dk)
    k = jnp.dot(xkv, wk_ref[0], preferred_element_type=jnp.float32) + bk_ref[0]  # (T,  dk)
    v = jnp.dot(xkv, wv_ref[0], preferred_element_type=jnp.float32) + bv_ref[0]  # (T,  dk)

    # scores = (q @ k^T) * scale as a contraction over d_k (no explicit transpose).
    scores = jax.lax.dot_general(
        q.astype(mm), k.astype(mm),
        dimension_numbers=(((1,), (1,)), ((), ())),
        preferred_element_type=jnp.float32) * scale                               # (tq, T)

    # Numerically stable softmax in fp32; normalization folded into the context.
    m = jnp.max(scores, axis=-1, keepdims=True)
    e = jnp.exp(scores - m)
    denom = jnp.sum(e, axis=-1, keepdims=True)
    inv_denom = pl.reciprocal(denom, approx=approx_recip)                          # (tq, 1)

    ctx = jnp.dot(e.astype(mm), v.astype(mm),
                  preferred_element_type=jnp.float32) * inv_denom                  # (tq, dk)

    # This head's slice of the output projection, accumulated over heads.
    acc_ref[...] += jnp.dot(ctx.astype(mm), wo_ref[0],
                            preferred_element_type=jnp.float32)                    # (tq, D)

    @pl.when(h == last_h)
    def _finalize():
        o_ref[0] = (acc_ref[...] + bo_ref[...]).astype(o_ref.dtype)


def multi_head_attention(x, w_qkv, b_qkv, w_out, b_out, *, num_heads,
                         q_tile=None, matmul_dtype=jnp.bfloat16,
                         approx_softmax_recip=True):
    """Fused MHA forward.  x: (B, T, D); w_qkv: (D, 3D); w_out: (D, D)."""
    B, T, D = x.shape
    assert D % num_heads == 0
    H = num_heads
    d_k = D // H

    if q_tile is None:
        q_tile = T if T <= 512 else 512
    assert T % q_tile == 0 and (q_tile == T or q_tile % 8 == 0)
    num_q_tiles = T // q_tile

    # Head-major weight layout, prepared once outside the kernel.
    def head_major(w):                        # (D, D) -> (H, D, d_k)
        return jnp.transpose(w.reshape(D, H, d_k), (1, 0, 2))

    wq = head_major(w_qkv[:, 0 * D:1 * D]).astype(matmul_dtype)
    wk = head_major(w_qkv[:, 1 * D:2 * D]).astype(matmul_dtype)
    wv = head_major(w_qkv[:, 2 * D:3 * D]).astype(matmul_dtype)
    bq = b_qkv[0, 0 * D:1 * D].reshape(H, 1, d_k).astype(jnp.float32)
    bk = b_qkv[0, 1 * D:2 * D].reshape(H, 1, d_k).astype(jnp.float32)
    bv = b_qkv[0, 2 * D:3 * D].reshape(H, 1, d_k).astype(jnp.float32)
    wo = w_out.reshape(H, d_k, D).astype(matmul_dtype)      # (H, d_k, D)
    bo = b_out.astype(jnp.float32)                           # (1, D)

    kernel = functools.partial(
        mha_kernel, scale=1.0 / math.sqrt(d_k), q_tile=q_tile,
        single_q_tile=(num_q_tiles == 1),
        matmul_dtype=matmul_dtype, approx_recip=approx_softmax_recip)

    head_w_spec = pl.BlockSpec((1, D, d_k), lambda b, qi, h: (h, 0, 0))
    head_b_spec = pl.BlockSpec((1, 1, d_k), lambda b, qi, h: (h, 0, 0))

    flops = int(2 * B * T * D * 3 * D + 4 * B * H * T * T * d_k + 2 * B * T * D * D)
    transcendentals = int(B * H * T * T)
    bytes_accessed = int(2 * x.size * x.dtype.itemsize
                         + 3 * wq.size * wq.dtype.itemsize
                         + wo.size * wo.dtype.itemsize
                         + 4 * (3 * bq.size + bo.size))

    return pl.pallas_call(
        kernel,
        out_shape=jax.ShapeDtypeStruct((B, T, D), x.dtype),
        grid_spec=pltpu.PrefetchScalarGridSpec(
            num_scalar_prefetch=0,
            grid=(B, num_q_tiles, H),                 # head axis last = reduction axis
            in_specs=[
                pl.BlockSpec((1, T, D), lambda b, qi, h: (b, 0, 0)),        # x (full seq)
                head_w_spec,                                                # W_q head
                head_b_spec,                                                # b_q head
                head_w_spec,                                                # W_k head
                head_b_spec,                                                # b_k head
                head_w_spec,                                                # W_v head
                head_b_spec,                                                # b_v head
                pl.BlockSpec((1, d_k, D), lambda b, qi, h: (h, 0, 0)),      # W_out head
                pl.BlockSpec((1, D), lambda b, qi, h: (0, 0)),              # b_out
            ],
            out_specs=pl.BlockSpec((1, q_tile, D), lambda b, qi, h: (b, qi, 0)),
            scratch_shapes=[pltpu.VMEM((q_tile, D), jnp.float32)],
        ),
        compiler_params=pltpu.CompilerParams(
            dimension_semantics=("parallel", "parallel", "arbitrary")),
        cost_estimate=pl.CostEstimate(flops=flops,
                                      transcendentals=transcendentals,
                                      bytes_accessed=bytes_accessed),
    )(x, wq, bq, wk, bk, wv, bv, wo, bo)


def reference_mha(x, w_qkv, b_qkv, w_out, b_out, *, num_heads):
    """Pure-JAX reference matching the PyTorch forward exactly (fp32)."""
    B, T, D = x.shape
    d_k = D // num_heads
    qkv = x @ w_qkv + b_qkv[0]
    q, k, v = jnp.split(qkv, 3, axis=-1)

    def split_heads(t):
        return t.reshape(B, T, num_heads, d_k).transpose(0, 2, 1, 3)

    q, k, v = split_heads(q), split_heads(k), split_heads(v)
    scores = jnp.einsum("bhtd,bhsd->bhts", q, k) / math.sqrt(d_k)
    attn = jax.nn.softmax(scores, axis=-1)
    ctx = jnp.einsum("bhts,bhsd->bhtd", attn, v)
    ctx = ctx.transpose(0, 2, 1, 3).reshape(B, T, D)
    return ctx @ w_out + b_out[0]


if __name__ == "__main__":
    B, T, d_model, num_heads = 2, 8, 32, 4

    key = jax.random.PRNGKey(0)
    kx, k1, k2, k3, k4 = jax.random.split(key, 5)
    bound = 1.0 / math.sqrt(d_model)

    x = jax.random.normal(kx, (B, T, d_model), dtype=jnp.float32)
    # PyTorch Linear stores (out, in) and computes x @ W.T; here we directly
    # generate the (in, out) matrices used as x @ W.
    w_qkv = jax.random.uniform(k1, (d_model, 3 * d_model), jnp.float32, -bound, bound)
    b_qkv = jax.random.uniform(k2, (1, 3 * d_model), jnp.float32, -bound, bound)
    w_out = jax.random.uniform(k3, (d_model, d_model), jnp.float32, -bound, bound)
    b_out = jax.random.uniform(k4, (1, d_model), jnp.float32, -bound, bound)

    ref = reference_mha(x, w_qkv, b_qkv, w_out, b_out, num_heads=num_heads)

    # 1) Exact-precision verification run (fp32 matmuls, exact reciprocal).
    out_f32 = multi_head_attention(x, w_qkv, b_qkv, w_out, b_out,
                                   num_heads=num_heads,
                                   matmul_dtype=jnp.float32,
                                   approx_softmax_recip=False)
    out_f32 = jax.block_until_ready(out_f32)
    assert out_f32.shape == (B, T, d_model)
    assert jnp.allclose(out_f32, ref, atol=1e-4, rtol=1e-4), "fp32 mismatch vs reference"

    # 2) Optimized production path (bf16 MXU operands + approx reciprocal).
    out_bf16 = multi_head_attention(x, w_qkv, b_qkv, w_out, b_out,
                                    num_heads=num_heads,
                                    matmul_dtype=jnp.bfloat16,
                                    approx_softmax_recip=True)
    out_bf16 = jax.block_until_ready(out_bf16)
    assert out_bf16.shape == (B, T, d_model)
    assert jnp.allclose(out_bf16, ref, atol=5e-2, rtol=5e-2), "bf16 mismatch vs reference"

    print("KERNEL_OK")
</pallas_src>

<mosaic_0001>
module attributes {stable_mosaic.version = 11 : i64} {
  func.func @mha_kernel(%arg0: i32, %arg1: i32, %arg2: i32, %arg3: memref<1x8x32xf32, #tpu.memory_space<vmem>>, %arg4: memref<1x32x8xf32, #tpu.memory_space<vmem>>, %arg5: memref<1x1x8xf32, #tpu.memory_space<vmem>>, %arg6: memref<1x32x8xf32, #tpu.memory_space<vmem>>, %arg7: memref<1x1x8xf32, #tpu.memory_space<vmem>>, %arg8: memref<1x32x8xf32, #tpu.memory_space<vmem>>, %arg9: memref<1x1x8xf32, #tpu.memory_space<vmem>>, %arg10: memref<1x8x32xf32, #tpu.memory_space<vmem>>, %arg11: memref<1x32xf32, #tpu.memory_space<vmem>>, %arg12: memref<1x8x32xf32, #tpu.memory_space<vmem>>, %arg13: memref<8x32xf32, #tpu.memory_space<vmem>>) attributes {dimension_semantics = [#tpu.dimension_semantics<parallel>, #tpu.dimension_semantics<parallel>, #tpu.dimension_semantics<arbitrary>], iteration_bounds = array<i64: 2, 1, 4>, scalar_prefetch = 0 : i64, scratch_operands = 1 : i64, tpu.core_type = #tpu.core_type<tc>, window_params = [{transform_indices = @transform_0, window_bounds = array<i64: 1, 8, 32>}, {transform_indices = @transform_1, window_bounds = array<i64: 1, 32, 8>}, {transform_indices = @transform_2, window_bounds = array<i64: 1, 1, 8>}, {transform_indices = @transform_3, window_bounds = array<i64: 1, 32, 8>}, {transform_indices = @transform_4, window_bounds = array<i64: 1, 1, 8>}, {transform_indices = @transform_5, window_bounds = array<i64: 1, 32, 8>}, {transform_indices = @transform_6, window_bounds = array<i64: 1, 1, 8>}, {transform_indices = @transform_7, window_bounds = array<i64: 1, 8, 32>}, {pipeline_mode = #tpu.pipeline_mode<synchronous>, transform_indices = @transform_8, window_bounds = array<i64: 1, 32>}, {transform_indices = @transform_9, window_bounds = array<i64: 1, 8, 32>}]} {
    %c0_i32 = arith.constant 0 : i32
    %0 = arith.cmpi eq, %arg2, %c0_i32 : i32
    %1 = arith.extui %0 : i1 to i32
    %c0_i32_0 = arith.constant 0 : i32
    %2 = arith.cmpi ne, %1, %c0_i32_0 : i32
    scf.if %2 {
      %cst_37 = arith.constant 0.000000e+00 : f32
      %49 = vector.broadcast %cst_37 : f32 to vector<8x32xf32>
      %c0_38 = arith.constant 0 : index
      %c0_39 = arith.constant 0 : index
      %50 = vector.load %arg13[%c0_38, %c0_39] : memref<8x32xf32, #tpu.memory_space<vmem>>, vector<8x32xf32>
      tpu.vector_store %arg13[%c0_38, %c0_39], %49 {strides = array<i32>} : memref<8x32xf32, #tpu.memory_space<vmem>>, vector<8x32xf32>,
    } else {
    }
    %c0 = arith.constant 0 : index
    %c0_1 = arith.constant 0 : index
    %c0_2 = arith.constant 0 : index
    %3 = vector.load %arg3[%c0, %c0_1, %c0_2] : memref<1x8x32xf32, #tpu.memory_space<vmem>>, vector<1x8x32xf32>
    %4 = vector.shape_cast %3 : vector<1x8x32xf32> to vector<8x32xf32>
    %c0_3 = arith.constant 0 : index
    %c0_4 = arith.constant 0 : index
    %c0_5 = arith.constant 0 : index
    %5 = vector.load %arg4[%c0_3, %c0_4, %c0_5] : memref<1x32x8xf32, #tpu.memory_space<vmem>>, vector<1x32x8xf32>
    %6 = vector.shape_cast %5 : vector<1x32x8xf32> to vector<32x8xf32>
    %cst = arith.constant dense<0.000000e+00> : vector<8x8xf32>
    %7 = tpu.matmul %4, %6, %cst {dimension_numbers = #tpu.dot_dimension_numbers<[1], [0], [0], [1], [0, 0, 1, 1], [], []>} : vector<8x32xf32>, vector<32x8xf32>, vector<8x8xf32> -> vector<8x8xf32>
    %c0_6 = arith.constant 0 : index
    %c0_7 = arith.constant 0 : index
    %c0_8 = arith.constant 0 : index
    %8 = vector.load %arg5[%c0_6, %c0_7, %c0_8] : memref<1x1x8xf32, #tpu.memory_space<vmem>>, vector<1x1x8xf32>
    %9 = vector.shape_cast %8 : vector<1x1x8xf32> to vector<1x8xf32>
    %10 = vector.broadcast %9 : vector<1x8xf32> to vector<8x8xf32>
    %11 = arith.addf %7, %10 : vector<8x8xf32>
    %c0_9 = arith.constant 0 : index
    %c0_10 = arith.constant 0 : index
    %c0_11 = arith.constant 0 : index
    %12 = vector.load %arg6[%c0_9, %c0_10, %c0_11] : memref<1x32x8xf32, #tpu.memory_space<vmem>>, vector<1x32x8xf32>
    %13 = vector.shape_cast %12 : vector<1x32x8xf32> to vector<32x8xf32>
    %cst_12 = arith.constant dense<0.000000e+00> : vector<8x8xf32>
    %14 = tpu.matmul %4, %13, %cst_12 {dimension_numbers = #tpu.dot_dimension_numbers<[1], [0], [0], [1], [0, 0, 1, 1], [], []>} : vector<8x32xf32>, vector<32x8xf32>, vector<8x8xf32> -> vector<8x8xf32>
    %c0_13 = arith.constant 0 : index
    %c0_14 = arith.constant 0 : index
    %c0_15 = arith.constant 0 : index
    %15 = vector.load %arg7[%c0_13, %c0_14, %c0_15] : memref<1x1x8xf32, #tpu.memory_space<vmem>>, vector<1x1x8xf32>
    %16 = vector.shape_cast %15 : vector<1x1x8xf32> to vector<1x8xf32>
    %17 = vector.broadcast %16 : vector<1x8xf32> to vector<8x8xf32>
    %18 = arith.addf %14, %17 : vector<8x8xf32>
    %c0_16 = arith.constant 0 : index
    %c0_17 = arith.constant 0 : index
    %c0_18 = arith.constant 0 : index
    %19 = vector.load %arg8[%c0_16, %c0_17, %c0_18] : memref<1x32x8xf32, #tpu.memory_space<vmem>>, vector<1x32x8xf32>
    %20 = vector.shape_cast %19 : vector<1x32x8xf32> to vector<32x8xf32>
    %cst_19 = arith.constant dense<0.000000e+00> : vector<8x8xf32>
    %21 = tpu.matmul %4, %20, %cst_19 {dimension_numbers = #tpu.dot_dimension_numbers<[1], [0], [0], [1], [0, 0, 1, 1], [], []>} : vector<8x32xf32>, vector<32x8xf32>, vector<8x8xf32> -> vector<8x8xf32>
    %c0_20 = arith.constant 0 : index
    %c0_21 = arith.constant 0 : index
    %c0_22 = arith.constant 0 : index
    %22 = vector.load %arg9[%c0_20, %c0_21, %c0_22] : memref<1x1x8xf32, #tpu.memory_space<vmem>>, vector<1x1x8xf32>
    %23 = vector.shape_cast %22 : vector<1x1x8xf32> to vector<1x8xf32>
    %24 = vector.broadcast %23 : vector<1x8xf32> to vector<8x8xf32>
    %25 = arith.addf %21, %24 : vector<8x8xf32>
    %cst_23 = arith.constant dense<0.000000e+00> : vector<8x8xf32>
    %26 = tpu.matmul %11, %18, %cst_23 {dimension_numbers = #tpu.dot_dimension_numbers<[1], [1], [0], [0], [0, 0, 1, 0], [], []>} : vector<8x8xf32>, vector<8x8xf32>, vector<8x8xf32> -> vector<8x8xf32>
    %cst_24 = arith.constant 0.353553385 : f32
    %27 = vector.broadcast %cst_24 : f32 to vector<8x8xf32>
    %28 = arith.mulf %26, %27 : vector<8x8xf32>
    %cst_25 = arith.constant dense<0xFF800000> : vector<8xf32>
    %29 = vector.multi_reduction <maximumf>, %28, %cst_25 [1] : vector<8x8xf32> to vector<8xf32>
    %30 = vector.shape_cast %29 : vector<8xf32> to vector<8x1xf32>
    %31 = vector.broadcast %30 : vector<8x1xf32> to vector<8x8xf32>
    %32 = arith.subf %28, %31 : vector<8x8xf32>
    %33 = math.exp %32 : vector<8x8xf32>
    %cst_26 = arith.constant dense<0.000000e+00> : vector<8xf32>
    %34 = vector.multi_reduction <add>, %33, %cst_26 [1] : vector<8x8xf32> to vector<8xf32>
    %35 = vector.shape_cast %34 : vector<8xf32> to vector<8x1xf32>
    %36 = tpu.reciprocal %35 : vector<8x1xf32> -> vector<8x1xf32>
    %cst_27 = arith.constant dense<0.000000e+00> : vector<8x8xf32>
    %37 = tpu.matmul %33, %25, %cst_27 {dimension_numbers = #tpu.dot_dimension_numbers<[1], [0], [0], [1], [0, 0, 1, 1], [], []>} : vector<8x8xf32>, vector<8x8xf32>, vector<8x8xf32> -> vector<8x8xf32>
    %38 = vector.broadcast %36 : vector<8x1xf32> to vector<8x8xf32>
    %39 = arith.mulf %37, %38 : vector<8x8xf32>
    %c0_28 = arith.constant 0 : index
    %c0_29 = arith.constant 0 : index
    %40 = vector.load %arg13[%c0_28, %c0_29] : memref<8x32xf32, #tpu.memory_space<vmem>>, vector<8x32xf32>
    %c0_30 = arith.constant 0 : index
    %c0_31 = arith.constant 0 : index
    %c0_32 = arith.constant 0 : index
    %41 = vector.load %arg10[%c0_30, %c0_31, %c0_32] : memref<1x8x32xf32, #tpu.memory_space<vmem>>, vector<1x8x32xf32>
    %42 = vector.shape_cast %41 : vector<1x8x32xf32> to vector<8x32xf32>
    %cst_33 = arith.constant dense<0.000000e+00> : vector<8x32xf32>
    %43 = tpu.matmul %39, %42, %cst_33 {dimension_numbers = #tpu.dot_dimension_numbers<[1], [0], [0], [1], [0, 0, 1, 1], [], []>} : vector<8x8xf32>, vector<8x32xf32>, vector<8x32xf32> -> vector<8x32xf32>
    %44 = arith.addf %40, %43 : vector<8x32xf32>
    %c0_34 = arith.constant 0 : index
    %c0_35 = arith.constant 0 : index
    %45 = vector.load %arg13[%c0_34, %c0_35] : memref<8x32xf32, #tpu.memory_space<vmem>>, vector<8x32xf32>
    tpu.vector_store %arg13[%c0_34, %c0_35], %44 {strides = array<i32>} : memref<8x32xf32, #tpu.memory_space<vmem>>, vector<8x32xf32>,
    %c3_i32 = arith.constant 3 : i32
    %46 = arith.cmpi eq, %arg2, %c3_i32 : i32
    %47 = arith.extui %46 : i1 to i32
    %c0_i32_36 = arith.constant 0 : i32
    %48 = arith.cmpi ne, %47, %c0_i32_36 : i32
    scf.if %48 {
      %c0_37 = arith.constant 0 : index
      %c0_38 = arith.constant 0 : index
      %49 = vector.load %arg13[%c0_37, %c0_38] : memref<8x32xf32, #tpu.memory_space<vmem>>, vector<8x32xf32>
      %c0_39 = arith.constant 0 : index
      %c0_40 = arith.constant 0 : index
      %50 = vector.load %arg11[%c0_39, %c0_40] : memref<1x32xf32, #tpu.memory_space<vmem>>, vector<1x32xf32>
      %51 = vector.broadcast %50 : vector<1x32xf32> to vector<8x32xf32>
      %52 = arith.addf %49, %51 : vector<8x32xf32>
      %c0_41 = arith.constant 0 : index
      %c0_42 = arith.constant 0 : index
      %c0_43 = arith.constant 0 : index
      %53 = vector.load %arg12[%c0_41, %c0_42, %c0_43] : memref<1x8x32xf32, #tpu.memory_space<vmem>>, vector<1x8x32xf32>
      %54 = vector.shape_cast %53 : vector<1x8x32xf32> to vector<8x32xf32>
      %55 = vector.shape_cast %52 : vector<8x32xf32> to vector<1x8x32xf32>
      tpu.vector_store %arg12[%c0_41, %c0_42, %c0_43], %55 {strides = array<i32>} : memref<1x8x32xf32, #tpu.memory_space<vmem>>, vector<1x8x32xf32>,
    } else {
    }
    return
  }
  func.func @transform_0(%arg0: i32, %arg1: i32, %arg2: i32) -> (i32, i32, i32) {
    %c0_i32 = arith.constant 0 : i32
    %c0_i32_0 = arith.constant 0 : i32
    %c0_i32_1 = arith.constant 0 : i32
    return %arg0, %c0_i32, %c0_i32_0 : i32, i32, i32
  }
  func.func @transform_1(%arg0: i32, %arg1: i32, %arg2: i32) -> (i32, i32, i32) {
    %c0_i32 = arith.constant 0 : i32
    %c0_i32_0 = arith.constant 0 : i32
    %c0_i32_1 = arith.constant 0 : i32
    return %arg2, %c0_i32, %c0_i32_0 : i32, i32, i32
  }
  func.func @transform_2(%arg0: i32, %arg1: i32, %arg2: i32) -> (i32, i32, i32) {
    %c0_i32 = arith.constant 0 : i32
    %c0_i32_0 = arith.constant 0 : i32
    %c0_i32_1 = arith.constant 0 : i32
    return %arg2, %c0_i32, %c0_i32_0 : i32, i32, i32
  }
  func.func @transform_3(%arg0: i32, %arg1: i32, %arg2: i32) -> (i32, i32, i32) {
    %c0_i32 = arith.constant 0 : i32
    %c0_i32_0 = arith.constant 0 : i32
    %c0_i32_1 = arith.constant 0 : i32
    return %arg2, %c0_i32, %c0_i32_0 : i32, i32, i32
  }
  func.func @transform_4(%arg0: i32, %arg1: i32, %arg2: i32) -> (i32, i32, i32) {
    %c0_i32 = arith.constant 0 : i32
    %c0_i32_0 = arith.constant 0 : i32
    %c0_i32_1 = arith.constant 0 : i32
    return %arg2, %c0_i32, %c0_i32_0 : i32, i32, i32
  }
  func.func @transform_5(%arg0: i32, %arg1: i32, %arg2: i32) -> (i32, i32, i32) {
    %c0_i32 = arith.constant 0 : i32
    %c0_i32_0 = arith.constant 0 : i32
    %c0_i32_1 = arith.constant 0 : i32
    return %arg2, %c0_i32, %c0_i32_0 : i32, i32, i32
  }
  func.func @transform_6(%arg0: i32, %arg1: i32, %arg2: i32) -> (i32, i32, i32) {
    %c0_i32 = arith.constant 0 : i32
    %c0_i32_0 = arith.constant 0 : i32
    %c0_i32_1 = arith.constant 0 : i32
    return %arg2, %c0_i32, %c0_i32_0 : i32, i32, i32
  }
  func.func @transform_7(%arg0: i32, %arg1: i32, %arg2: i32) -> (i32, i32, i32) {
    %c0_i32 = arith.constant 0 : i32
    %c0_i32_0 = arith.constant 0 : i32
    %c0_i32_1 = arith.constant 0 : i32
    return %arg2, %c0_i32, %c0_i32_0 : i32, i32, i32
  }
  func.func @transform_8(%arg0: i32, %arg1: i32, %arg2: i32) -> (i32, i32) {
    %c0_i32 = arith.constant 0 : i32
    %c0_i32_0 = arith.constant 0 : i32
    %c0_i32_1 = arith.constant 0 : i32
    return %c0_i32, %c0_i32_0 : i32, i32
  }
  func.func @transform_9(%arg0: i32, %arg1: i32, %arg2: i32) -> (i32, i32, i32) {
    %c0_i32 = arith.constant 0 : i32
    %c0_i32_0 = arith.constant 0 : i32
    return %arg0, %arg1, %c0_i32 : i32, i32, i32
  }
}

</mosaic_0001>

<bundles_post_ra>
// kernel: tpu_custom_call.1
= control target key start
LH: loop header
LB: loop body
LE: loop exit
PB: predicated region body
PF: predicated region fallthrough
CT: control target
= control target key end

     0   :  { %s1706_s0 = inlined_call_operand.vmem [shape: f32[2,8,32], index: 0, kind: input, shape index: {}]   ;;  %s1707_s1 = inlined_call_operand.vmem [shape: f32[4,32,8], index: 1, kind: input, shape index: {}]   ;;  %s1708_s2 = inlined_call_operand.vmem [shape: f32[4,1,8], index: 2, kind: input, shape index: {}]   ;;  %s1709_s3 = inlined_call_operand.vmem [shape: f32[4,32,8], index: 3, kind: input, shape index: {}]   ;;  %s1710_s4 = inlined_call_operand.vmem [shape: f32[4,1,8], index: 4, kind: input, shape index: {}]   ;;  %s1711_s5 = inlined_call_operand.vmem [shape: f32[4,32,8], index: 5, kind: input, shape index: {}]   ;;  %s1712_s6 = inlined_call_operand.vmem [shape: f32[4,1,8], index: 6, kind: input, shape index: {}]   ;;  %s1713_s7 = inlined_call_operand.vmem [shape: f32[4,8,32], index: 7, kind: input, shape index: {}]   ;;  %s1714_s8 = inlined_call_operand.vmem [shape: f32[1,32], index: 8, kind: input, shape index: {}]   ;;  %s1715_s9 = inlined_call_operand.hbm [shape: f32[2,8,32], index: 9, kind: output, shape index: {}]  }
   0x1   :  { %1728 = sst [smem:[#allocation16_spill]] %s1706_s0 }
   0x2   :  { %1729 = sst [smem:[#allocation17_spill]] %s1707_s1 }
   0x3   :  { %1730 = sst [smem:[#allocation18_spill]] %s1715_s9 }
   0x4   :  { %14 = vsyncpa [#allocation4], 0 }
   0x5   :  { %16 = vsyncpa [#allocation4 + $0x1], 0  ;;  %s1490_s30 = smov 0   ;;  %s1492_s10 = smov 0  }
   0x6   :  { %s1494_s11 = smov 0   ;;  %s1496_s12 = smov 0  }
   0x7   :  { %s1498_s13 = smov 0   ;;  %s1500_s14 = smov 0  }
   0x8   :  { %s1502_s15 = smov 0   ;;  %s1504_s16 = smov 0  }
   0x9 LB: > { %1731 = sst [smem:[#allocation6_spill]] %s1405_s30  ;;  %s1139_s17 = sadd.s32 4294967295, %s1433_s16   ;;  %s1433_s16 = sphi %s1504_s16, %s22_s16   ;;  %s1429_s15 = sphi %s1502_s15, %s1758_s15   ;;  %s1425_s14 = sphi %s1500_s14, %s1757_s14   ;;  %s1421_s13 = sphi %s1498_s13, %s1756_s13   ;;  %s1417_s12 = sphi %s1496_s12, %s1755_s12   ;;  %s1413_s11 = sphi %s1494_s11, %s1754_s11   ;;  %s1409_s10 = sphi %s1492_s10, %s1760_s10   ;;  %s1405_s30 = sphi %s1490_s30, %s1759_s30  }
   0xa   : > { %1732 = sst [smem:[#allocation7_spill]] %s1413_s11  ;;  %s1140_s18 = sadd.s32 4294967294, %s1433_s16  }
   0xb   : > { %1733 = sst [smem:[#allocation8_spill]] %s1425_s14  ;;  %s34_s19 = sadd.s32 1, %s1425_s14 }
   0xc   : > { %1734 = sst [smem:[#allocation9_spill]] %s1429_s15  ;;  %p35_p0 = scmp.ge.s32.totalorder %s34_s19, 4 }
   0xd   : > { %1735 = sst [smem:[#allocation10_spill]] %s1433_s16  ;;  %s41_s20 = sadd.s32 1, %s1429_s15 }
   0xe   : > { %p289_p1 = scmp.ne.s32.totalorder %s1413_s11, %s1409_s10  ;;  %p290_p2 = scmp.eq.s32.totalorder %s1139_s17, 7 }
   0xf   : > { %s1762_s19 = smov (%p35_p0, %s34_s19), 0  ;;  %s1764_s20 = smov (!%p35_p0, %s41_s20), %s1429_s15 }
  0x10   : > { %1736 = sst [smem:[#allocation11_spill]] %s1762_s19  ;;  %p1539_p3 = por %p290_p2, %p289_p1 }
  0x11   : > { %p295_p4 = scmp.ne.s32.totalorder %s1409_s10, %s1405_s30  ;;  %p43_p5 = scmp.ge.s32.totalorder %s1764_s20, 2 }
  0x12   : > { %s1737_s21 = scalar_select %p1539_p3, 1, 0 }
  0x13   : > { %p296_p6 = scmp.eq.s32.totalorder %s1140_s18, 7  ;;  %p1143_p7 = scmp.ge.s32.totalorder %s1433_s16, 1 }
  0x14   : > { %1738 = sst [smem:[#allocation12_spill]] %s1737_s21  ;;  %p373_p8 = scmp.lt.s32.totalorder %s1433_s16, 9 }
  0x15   : > { %s1766_s20 = smov (%p43_p5, %s1764_s20), 0  ;;  %p1549_p9 = por %p296_p6, %p295_p4 }
  0x16   : > { %1739 = sst [smem:[#allocation13_spill]] %s1766_s20  ;;  %p374_p10 = pnand %p1143_p7, %p373_p8 }
  0x17   : > { %s1740_s22 = scalar_select %p1549_p9, 1, 0 }
  0x18   : > { %s274_s23 = ssub.s32 %s1429_s15, %s1766_s20  ;;  %s279_s24 = sadd.s32 1, %s1413_s11 }
  0x19   : > { %1741 = sst [smem:[#allocation14_spill]] %s1740_s22  ;;  %p277_p11 = scmp.eq.s32.totalorder %s274_s23, 0 }
  0x1a   : > { %377 = sbr.rel (%p374_p10) target bundleno = 1107 (0x453), region = 56  ;;  %s1717_s26 = sand.u32 (!%p374_p10), 1, %s1409_s10  }
  0x1b   : > { %s1557_s25 = scalar_select %p277_p11, %s1413_s11, %s279_s24  }
  0x1c   : > { %p436_p12 = scmp.lt.s32.totalorder (!%p374_p10), %s1421_s13, 1  ;;  %s1563_s27 = sshll.u32 (!%p374_p10), %s1717_s26, 3 }
  0x1d   : > { %1742 = sst [smem:[#allocation15_spill]] %s1557_s25  ;;  %p440_p13 = scmp.lt.s32.totalorder (!%p374_p10), %s1417_s12, 3 }
  0x1e   : > { %s1743_s0 = sld [smem:[#allocation16_spill]] (!%p374_p10)  ;;  %s1744_s1 = sld [smem:[#allocation17_spill]] (!%p374_p10) }
  0x1f   : > { %s435_s30 = scalar_lea.vmem (!%p374_p10), [#allocation3], %s1563_s27  ;;  %p1153_p0 = scmp.ne.s32.totalorder (!%p374_p10), %s1417_s12, 0 }
  0x21   : > { %s437_s28 = scalar_select %p436_p12, %s1421_s13, 1 }
  0x22   : > { %s1568_s29 = scalar_select %p440_p13, %s1417_s12, 3 }
  0x23   : > { %s1145_s17 = sshll.u32 %s437_s28, 3  ;;  %471 = sbr.rel (%p1153_p0) target bundleno = 42 (0x2a), region = 60  ;;  %vm472_vm0 = vcmask (!%p1153_p0), 261120   ;;  %v1435_v0 = vmov (!%p1153_p0), 0.0  }
  0x24   : > { %s1573_s24 = scalar_lea.vmem %s1743_s0, %s1145_s17  ;;  %s1170_s20 = sshll.u32 %s1568_s29, 5  ;;  %473 = vst.msk [vmem:[#allocation2] sm:$0xff] (!%p1153_p0), %vm472_vm0, %v1435_v0 }
  0x25   : > { %s444_s15 = scalar_lea.vmem %s1744_s1, %s1170_s20  ;;  %s452_s16 = scalar_lea.vmem %s1709_s3, %s1170_s20 }
  0x26   : > { %s455_s21 = scalar_lea.vmem %s1710_s4, %s1568_s29  ;;  %s1593_s23 = scalar_lea.vmem %s1711_s5, %s1170_s20 }
  0x27   : > { %s463_s26 = scalar_lea.vmem %s1712_s6, %s1568_s29  ;;  %s1152_s1 = sshll.u32 %s1568_s29, 3 }
  0x28   : > { %s1603_s11 = scalar_lea.vmem %s1713_s7, %s1152_s1 }
  0x2a PF: > { %v560_v1 = vld [vmem:[%s452_s16] sm:$0xff]  ;;  %v561_v2 = vld [vmem:[%s452_s16 + $0x8] sm:$0xff]  ;;  %v1436_v4 = vmov 0.0|0.0   ;;  %v562_v7 = vld [vmem:[%s452_s16 + $0x10] sm:$0xff]  ;;  %vm1437_vm1 = vmmov 0   ;;  %v1438_v10 = vmov 0.0  }
  0x2b   : > { %v475_v3 = vld [vmem:[%s444_s15] sm:$0xff]  ;;  %1248 = vmatprep.subr.bf16.mxu1 %v1436_v4  ;;  %v1249_v5 = vpack.c.bf16 %v561_v2, %v560_v1  ;;  %1242 = vmatprep.subr.bf16.mxu0 %v1436_v4  ;;  %v476_v6 = vld [vmem:[%s444_s15 + $0x8] sm:$0xff]  ;;  %v563_v8 = vld [vmem:[%s452_s16 + $0x18] sm:$0xff]  ;;  %vm486_vm2 = vcmask 261120   ;;  %s1745_s16 = scalar_lea.vmem %s1708_s2, %s1568_s29  ;;  %vm722_vm3 = vcmask 64512   ;;  %p1164_p1 = scmp.ne.s32.totalorder %s1417_s12, 3 }
  0x2c   : > { %v1243_v9 = vpack.c.bf16 %v476_v6, %v475_v3  ;;  %1213 = vmatprep.mubr.msk.f32.mxu1 %vm1437_vm1, %v1438_v10  ;;  %v477_v11 = vld [vmem:[%s444_s15 + $0x10] sm:$0xff]  ;;  %v478_v12 = vld [vmem:[%s444_s15 + $0x18] sm:$0xff]  ;;  %1202 = vmatprep.mubr.msk.f32.mxu0 %vm1437_vm1, %v1438_v10  ;;  %v1252_v13 = vpack.c.bf16 %v563_v8, %v562_v7  ;;  %v474_v15 = vld [vmem:[%s1573_s24] sm:$0xff] }
  0x2d   : > { %1250 = vmatpush3.bf16.msra.mxu1 %v1249_v5  ;;  %v1246_v14 = vpack.c.bf16 %v478_v12, %v477_v11  ;;  %v641_v16 = vld [vmem:[%s1593_s23] sm:$0xff]  ;;  %v642_v17 = vld [vmem:[%s1593_s23 + $0x8] sm:$0xff]  ;;  %v643_v18 = vld [vmem:[%s1593_s23 + $0x10] sm:$0xff] }
  0x2e   : > { %1244 = vmatpush3.bf16.msra.mxu0 %v1243_v9  ;;  %1251 = vmatprep.subr.bf16.mxu1 %v1436_v4  ;;  %v1255_v19 = vpack.c.bf16 %v642_v17, %v641_v16  ;;  %v644_v20 = vld [vmem:[%s1593_s23 + $0x18] sm:$0xff]  ;;  %v1156_v22 = vld [vmem:[%s455_s21] ss:$0 sm:$0xff] }
  0x2f   : > { %1245 = vmatprep.subr.bf16.mxu0 %v1436_v4  ;;  %v1258_v21 = vpack.c.bf16 %v644_v20, %v643_v18  ;;  %v1154_v23 = vld [vmem:[%s1745_s16] ss:$0 sm:$0xff] }
  0x30   : > { %v1158_v34 = vld [vmem:[%s463_s26] ss:$0 sm:$0xff] }
  0x31   : > { %1253 = vmatpush3.bf16.msra.mxu1 %v1252_v13  ;;  %v885_v43 = vld [vmem:[%s1603_s11] sm:$0xff] }
  0x32   : > { %1247 = vmatpush3.bf16.msra.mxu0 %v1246_v14  ;;  %1227 = vmatprep.subr.mxu1 %v1438_v10  ;;  %v884_v49 = vld [vmem:[#allocation2] sm:$0xff] }
  0x33   : > { %1254 = vmatprep.subr.bf16.mxu0 %v1436_v4  ;;  %v1165_v54 = vld [vmem:[%s1714_s8] ss:$0 sm:$0xff] (!%p1164_p1) }
  0x34   : > { %1214 = vmatmul.mubr.msk.f32.vlgmr.msra.gmra.mrb[0].mxu1 %vm486_vm2, %v474_v15 }
  0x35   : > { %1203 = vmatmul.mubr.msk.f32.vlgmr.msra.gmra.mrb[0].mxu0 %vm486_vm2, %v474_v15  ;;  %1229 = vmatprep.mubr.msk.f32.mxu1 %vm1437_vm1, %v1438_v10 }
  0x36   : > { %1224 = vmatprep.mubr.msk.f32.mxu0 %vm1437_vm1, %v1438_v10  ;;  %1256 = vmatpush3.bf16.msra.mxu0 %v1255_v19 }
  0x37   : > { %1257 = vmatprep.subr.bf16.mxu0 %v1436_v4 }
  0x3a   : > { %1259 = vmatpush3.bf16.msra.mxu0 %v1258_v21 }
  0x3b   : > { %1237 = vmatprep.subr.mxu0 %v1438_v10 }
  0x3d   : > { %1225 = vmatmul.mubr.msk.f32.vlgmr.msra.gmra.mrb[2].mxu0 %vm486_vm2, %v474_v15 }
  0x3e   : > { %1239 = vmatprep.mubr.msk.f32.mxu0 %vm1437_vm1, %v1438_v10  ;;  %1238 = vmatpush3.msra.mxu0 %v885_v43 }
 0x107   : > { %v637_v24 = vpop.f32.mrb[0].mxu1 }
 0x108   : > { %v638_v25 = vadd.f32 %v1156_v22, %v637_v24  ;;  %v1215_v26 = vpop.f32.mrb[1].mxu1  ;;  %v556_v27 = vpop.f32.mrb[0].mxu0 }
 0x109   : > { %v557_v28 = vadd.f32 %v1154_v23, %v556_v27  ;;  %v1204_v29 = vpop.f32.mrb[1].mxu0 }
 0x10a   : > { %1228 = vmatpush3.xpose.msk.msra.mxu1 %vm722_vm3, %v638_v25 }
 0x10b   : > { %1232 = vmatprep.subr.mxu1 %v1438_v10 }
 0x10d   : > { %1230 = vmatmul.mubr.msk.f32.vlgmr.msra.gmra.mrb[2].mxu1 %vm722_vm3, %v557_v28 }
 0x10e   : > { %1234 = vmatprep.mubr.msk.f32.mxu1 %vm1437_vm1, %v1438_v10 }
 0x110   : > { %v718_v35 = vpop.f32.mrb[2].mxu0 }
 0x111   : > { %v719_v36 = vadd.f32 %v1158_v34, %v718_v35  ;;  %v1226_v37 = vpop.f32.mrb[3].mxu0 }
 0x113   : > { %1233 = vmatpush3.msra.mxu1 %v719_v36 }
 0x1e0   : > { %v795_v30 = vpop.f32.mrb[2].mxu1 }
 0x1e1   : > { %v799_v31 = vmul.f32 0.35355338, %v795_v30  ;;  %v1231_v32 = vpop.f32.mrb[3].mxu1 }
 0x1e3   : > { %v800_v33 = vsel %vm722_vm3, %v799_v31, -inf }
 0x1e4   : > { %801 = vmax.xlane.f32.xlu0 %v800_v33 }
 0x271   : > { %v802_v38 = vpop.xlane.xlu0 %801 }
 0x272   : > { %v803_v39 = vsub.f32 %v799_v31, %v802_v38 }
 0x274   : > { %v804_v40 = vmul.f32 1.442695, %v803_v39 }
 0x276   : > { %1335 = vpow2.f32 %v804_v40 }
 0x280   : > { %v1336_v41 = vpop.eup %1335 }
 0x281   : > { %1235 = vmatmul.mubr.msk.f32.vlgmr.msra.gmra.mrb[4].mxu1 %vm722_vm3, %v1336_v41  ;;  %v806_v42 = vsel %vm722_vm3, %v1336_v41, 0.0 }
 0x282   : > { %807 = vadd.xlane.f32.xlu0 %v806_v42 }
 0x30f   : > { %v808_v44 = vpop.xlane.xlu0 %807 }
 0x310   : > { %1337 = vrcp.f32 %v808_v44 }
 0x31a   : > { %v1338_v45 = vpop.eup %1337 }
 0x354   : > { %v879_v46 = vpop.f32.mrb[4].mxu1 }
 0x355   : > { %v883_v47 = vmul.f32 %v1338_v45, %v879_v46  ;;  %v1236_v48 = vpop.f32.mrb[5].mxu1 }
 0x357   : > { %1240 = vmatmul.mubr.msk.f32.vlgmr.msra.gmra.mrb[4].mxu0 %vm722_vm3, %v883_v47 }
 0x427   : > { %964 = sbr.rel (%p1164_p1) target bundleno = 1080 (0x438), region = 64 }
 0x42a   : > { %v955_v50 = vpop.f32.mrb[4].mxu0 }
 0x42b   : > { %v959_v51 = vadd.f32 %v955_v50, %v884_v49  ;;  %v1241_v52 = vpop.f32.mrb[5].mxu0 }
 0x42d   : > { %960 = vst.msk [vmem:[#allocation2] sm:$0xff] %vm486_vm2, %v959_v51 }
 0x434   : > { %v965_v53 = vld [vmem:[#allocation2] sm:$0xff] }
 0x435   : > { %v973_v55 = vadd.f32 %v1165_v54, %v965_v53 }
 0x437   : > { %974 = vst.msk [vmem:[%s435_s30] sm:$0xff] %vm486_vm2, %v973_v55 }
 0x438 PF: > { %s1167_s24 = sshll.u32 %s1421_s13, 7  ;;  %s1747_s12 = sld [smem:[#allocation18_spill]] }
 0x439   : > { %s990_s19 = sshll.u32 %s435_s30, 4  ;;  %s1749_s26 = sand.u32 1, %s1409_s10   ;;  %s991_s19 = int_to_ptr.vmem [resolvable:$true] %s990_s19 }
 0x43a   : > { %s976_s14 = scalar_lea.sflag [#allocation4], %s1749_s26  ;;  %s1339_s25 = scalar_lea.vmem %s991_s19, 128 }
 0x43b   : > { %p1340_p2 = scmp.ne.s32.totalorder %s991_s19, %s1339_s25  ;;  %s1439_s0 = smov [#allocation3]  }
 0x43c   : > { %s1343_s1 = sshll.u32 %s1439_s0, 4  ;;  %s1344_s1 = int_to_ptr.vmem [resolvable:$false] %s1343_s1 }
 0x43d   : > { %p1341_p4 = pnand %p1340_p2, %p1539_p3  ;;  %s1345_s9 = scalar_lea.vmem %s1344_s1, 256 }
 0x43e   : > { %s1748_s17 = smov %s1747_s12  ;;  %s1655_s23 = scalar_lea.hbm %s1747_s12, %s1167_s24 }
 0x43f   : > { %p1342_p5 = pneg %p1341_p4  ;;  %p1346_p6 = scmp.lt.s32.totalorder %s991_s19, %s1344_s1 }
 0x440   : > { %p1347_p7 = scmp.lt.s32.totalorder %s1345_s9, %s1339_s25 }
 0x442   : > { %p1348_p8 = por %p1347_p7, %p1346_p6 }
 0x444   : > { %p1349_p10 = pnand %p1348_p8, %p1342_p5 }
 0x446   : > { %1352 = shalt.err (!%p1349_p10)
}
 0x447   : > { %s1353_s13 = scalar_lea.hbm %s1655_s23, 128  ;;  %s1357_s15 = scalar_lea.hbm %s1748_s17, 256 }
 0x448   : > { %p1354_p11 = scmp.ne.s32.totalorder %s1655_s23, %s1353_s13  ;;  %p1358_p0 = scmp.lt.u32.totalorder %s1655_s23, %s1748_s17 }
 0x449   : > { %p1359_p1 = scmp.lt.u32.totalorder %s1357_s15, %s1353_s13  ;;  %p1361_p4 = scmp.lt.u32.totalorder %s1353_s13, %s1655_s23 }
 0x44a   : > { %p1355_p12 = pnand %p1354_p11, %p1539_p3 }
 0x44b   : > { %p1360_p2 = por %p1359_p1, %p1358_p0 }
 0x44c   : > { %p1356_p13 = pneg %p1355_p12 }
 0x44d   : > { %p1362_p5 = por %p1361_p4, %p1360_p2 }
 0x44f   : > { %p1363_p6 = pnand %p1362_p5, %p1356_p13 }
 0x451   : > { %1366 = shalt.err (!%p1363_p6)
}
 0x452   : > { %1260 = dma.vmem_to_hbm [thread:$0]  (%p1539_p3), %s991_s19, 128, %s1655_s23, %s976_s14  }
 0x453 PF: > { %s1750_s21 = sld [smem:[#allocation10_spill]]  ;;  %s1751_s11 = sld [smem:[#allocation6_spill]] }
 0x459   : > { %p1266_p7 = scmp.ge.s32.totalorder %s1750_s21, 2  ;;  %s1002_s24 = sand.u32 1, %s1751_s11  }
 0x45a   : > { %s1003_s28 = scalar_lea.sflag [#allocation4], %s1002_s24 }
 0x45b   : > { %p1263_p8 = pnand %p1266_p7, %p1549_p9 }
 0x45d   : > { %1400 = dma.done.wait (!%p1263_p8), %s1003_s28, 128  }
 0x45e   : > { %1402 = vsyncadd (!%p1263_p8), %s1003_s28, 4294967168  ;;  %s22_s16 = sadd.s32 1, %s1750_s21   ;;  %s1753_s18 = sld [smem:[#allocation7_spill]] }
 0x45f   : > { %p19_p10 = scmp.ge.s32.totalorder %s22_s16, 10   ;;  %s1754_s11 = sld [smem:[#allocation15_spill]] }
 0x460   : > { %s1755_s12 = sld [smem:[#allocation8_spill]]  ;;  %s1756_s13 = sld [smem:[#allocation9_spill]] }
 0x461   : > { %s1757_s14 = sld [smem:[#allocation11_spill]]  ;;  %s1758_s15 = sld [smem:[#allocation13_spill]] }
 0x462   : > { %s1759_s30 = smov %s1409_s10  ;;  %21 = sbr.rel (!%p19_p10) target bundleno = 9 (0x9), region = 120 }
 0x464   : > { %s1760_s10 = smov %s1753_s18 }
 0x469   :  { %1008 = vsyncpa [#allocation4], 1 }
 0x46a   :  { %1010 = vsyncpa [#allocation4 + $0x1], 1 }

</bundles_post_ra>
